<compile_context>
chip_gen: v7x
topology: tpu7x:2x2x1
jax: 0.10.0
libtpu: 0.0.40
codegen_flags: <defaults>
</compile_context>

<pallas_src>
import jax
import jax.numpy as jnp
from jax.experimental import pallas as pl
from jax.experimental.pallas import tpu as pltpu


def _ce_rowloss_kernel(x_ref, t_ref, loss_ref):
    """One grid step: (tile_n, C) logits + soft targets -> (tile_n, 1) row losses."""
    x = x_ref[...].astype(jnp.float32)          # (tile_n, C)
    t = t_ref[...].astype(jnp.float32)          # (tile_n, C)

    # numerically-stable log-sum-exp along the class (lane) axis
    m = jnp.max(x, axis=-1, keepdims=True)      # (tile_n, 1)
    shifted = x - m                             # (tile_n, C)
    lse = jnp.log(jnp.sum(jnp.exp(shifted), axis=-1, keepdims=True))  # (tile_n, 1)

    # -sum((shifted - lse) * t, axis=-1) == lse * sum(t) - sum(shifted * t)
    # (avoids materializing the full logprob slab; exact for any target scale)
    t_sum = jnp.sum(t, axis=-1, keepdims=True)              # (tile_n, 1)
    st = jnp.sum(shifted * t, axis=-1, keepdims=True)       # (tile_n, 1)
    loss_ref[...] = lse * t_sum - st                        # (tile_n, 1)


def _round_up(a, b):
    return (a + b - 1) // b * b


def cross_entropy_loss(x, target, *, reduction="mean"):
    """Soft-target cross entropy matching the PyTorch CrossEntropyLoss module.

    x, target: (N, C) arrays (any float dtype; bf16 welcome — halves HBM traffic).
    reduction: 'mean' | 'sum' | 'none'.
    """
    assert x.shape == target.shape and x.ndim == 2
    assert reduction in ("mean", "sum", "none")
    N, C = x.shape

    itemsize = max(jnp.dtype(x.dtype).itemsize, jnp.dtype(target.dtype).itemsize)

    # Tile-size selection: 2 inputs x 2 pipeline buffers x tile_n x C x itemsize
    # kept under ~32 MiB (headroom for v7x's 64 MiB physical VMEM; v5e/v6e have
    # more but 32 MiB of streamed data already sits near HBM roofline).
    vmem_data_budget = 32 * 1024 * 1024
    tile_cap = vmem_data_budget // (4 * C * itemsize)
    tile_n = min(max(tile_cap, 16), 1024, _round_up(N, 16))
    tile_n = max(16, (tile_n // 16) * 16)  # multiple of 16 (bf16 sublane packing)
    # TODO(synk): for very large vocab C (>= ~32K) add a class-axis grid with an
    # online (flash-style) logsumexp instead of a single full-C block per tile.

    n_pad = _round_up(N, tile_n)
    if n_pad != N:
        pad = n_pad - N
        # zero logits + zero targets => exactly 0 loss for padded rows
        x = jnp.pad(x, ((0, pad), (0, 0)))
        target = jnp.pad(target, ((0, pad), (0, 0)))

    per_row = pl.pallas_call(
        _ce_rowloss_kernel,
        out_shape=jax.ShapeDtypeStruct((n_pad, 1), jnp.float32),
        grid_spec=pltpu.PrefetchScalarGridSpec(
            num_scalar_prefetch=0,
            grid=(n_pad // tile_n,),
            in_specs=[
                pl.BlockSpec((tile_n, C), lambda i: (i, 0)),
                pl.BlockSpec((tile_n, C), lambda i: (i, 0)),
            ],
            out_specs=pl.BlockSpec((tile_n, 1), lambda i: (i, 0)),
        ),
        compiler_params=pltpu.CompilerParams(
            # independent tiles -> shard across TensorCores on v7x megacore
            dimension_semantics=("parallel",),
            # raise scoped VMEM so the large double-buffered tiles fit
            # (stays well under v7x's 64 MiB physical VMEM)
            vmem_limit_bytes=48 * 1024 * 1024,
        ),
    )(x, target)

    loss = per_row[:N, 0]
    if reduction == "mean":
        return loss.mean()
    if reduction == "sum":
        return loss.sum()
    return loss


def _reference(x, target, reduction="mean"):
    logprob = jax.nn.log_softmax(x.astype(jnp.float32), axis=1)
    loss = -jnp.sum(logprob * target.astype(jnp.float32), axis=1)
    if reduction == "mean":
        return loss.mean()
    if reduction == "sum":
        return loss.sum()
    return loss


if __name__ == "__main__":
    key = jax.random.PRNGKey(0)

    # --- test 1: f32, lane-dense class dim, 'mean' reduction ---
    k1, k2, k3, k4 = jax.random.split(key, 4)
    N, C = 16, 128
    x = jax.random.normal(k1, (N, C), dtype=jnp.float32)
    target = jax.nn.softmax(jax.random.normal(k2, (N, C), dtype=jnp.float32), axis=1)

    loss = jax.block_until_ready(cross_entropy_loss(x, target, reduction="mean"))
    ref = _reference(x, target, reduction="mean")
    assert jnp.allclose(loss, ref, rtol=1e-4, atol=1e-4), (loss, ref)

    # --- test 2: odd N (exercises row padding), C not a multiple of 128, 'sum' ---
    N2, C2 = 50, 96
    x2 = jax.random.normal(k3, (N2, C2), dtype=jnp.float32)
    target2 = jax.nn.softmax(jax.random.normal(k4, (N2, C2), dtype=jnp.float32), axis=1)

    loss2 = jax.block_until_ready(cross_entropy_loss(x2, target2, reduction="sum"))
    ref2 = _reference(x2, target2, reduction="sum")
    assert jnp.allclose(loss2, ref2, rtol=1e-4, atol=1e-4), (loss2, ref2)

    # --- test 3: bf16 inputs (half the HBM bytes), 'mean' ---
    xb = x.astype(jnp.bfloat16)
    tb = target.astype(jnp.bfloat16)
    loss3 = jax.block_until_ready(cross_entropy_loss(xb, tb, reduction="mean"))
    ref3 = _reference(xb, tb, reduction="mean")
    assert jnp.allclose(loss3, ref3, rtol=1e-3, atol=1e-3), (loss3, ref3)

    print("KERNEL_OK")
</pallas_src>

<mosaic_0001>
module attributes {stable_mosaic.version = 11 : i64} {
  func.func @_ce_rowloss_kernel(%arg0: i32, %arg1: memref<16x128xf32, #tpu.memory_space<vmem>>, %arg2: memref<16x128xf32, #tpu.memory_space<vmem>>, %arg3: memref<16x1xf32, #tpu.memory_space<vmem>>) attributes {dimension_semantics = [#tpu.dimension_semantics<parallel>], iteration_bounds = array<i64: 1>, scalar_prefetch = 0 : i64, scratch_operands = 0 : i64, tpu.core_type = #tpu.core_type<tc>, window_params = [{transform_indices = @transform_0, window_bounds = array<i64: 16, 128>}, {transform_indices = @transform_1, window_bounds = array<i64: 16, 128>}, {transform_indices = @transform_2, window_bounds = array<i64: 16, 1>}]} {
    %c0 = arith.constant 0 : index
    %c0_0 = arith.constant 0 : index
    %0 = vector.load %arg1[%c0, %c0_0] : memref<16x128xf32, #tpu.memory_space<vmem>>, vector<16x128xf32>
    %c0_1 = arith.constant 0 : index
    %c0_2 = arith.constant 0 : index
    %1 = vector.load %arg2[%c0_1, %c0_2] : memref<16x128xf32, #tpu.memory_space<vmem>>, vector<16x128xf32>
    %cst = arith.constant dense<0xFF800000> : vector<16xf32>
    %2 = vector.multi_reduction <maximumf>, %0, %cst [1] : vector<16x128xf32> to vector<16xf32>
    %3 = vector.shape_cast %2 : vector<16xf32> to vector<16x1xf32>
    %4 = vector.broadcast %3 : vector<16x1xf32> to vector<16x128xf32>
    %5 = arith.subf %0, %4 : vector<16x128xf32>
    %6 = math.exp %5 : vector<16x128xf32>
    %cst_3 = arith.constant dense<0.000000e+00> : vector<16xf32>
    %7 = vector.multi_reduction <add>, %6, %cst_3 [1] : vector<16x128xf32> to vector<16xf32>
    %8 = vector.shape_cast %7 : vector<16xf32> to vector<16x1xf32>
    %9 = math.log %8 : vector<16x1xf32>
    %cst_4 = arith.constant dense<0.000000e+00> : vector<16xf32>
    %10 = vector.multi_reduction <add>, %1, %cst_4 [1] : vector<16x128xf32> to vector<16xf32>
    %11 = vector.shape_cast %10 : vector<16xf32> to vector<16x1xf32>
    %12 = arith.mulf %5, %1 : vector<16x128xf32>
    %cst_5 = arith.constant dense<0.000000e+00> : vector<16xf32>
    %13 = vector.multi_reduction <add>, %12, %cst_5 [1] : vector<16x128xf32> to vector<16xf32>
    %14 = vector.shape_cast %13 : vector<16xf32> to vector<16x1xf32>
    %15 = arith.mulf %9, %11 : vector<16x1xf32>
    %16 = arith.subf %15, %14 : vector<16x1xf32>
    %c0_6 = arith.constant 0 : index
    %c0_7 = arith.constant 0 : index
    %17 = vector.load %arg3[%c0_6, %c0_7] : memref<16x1xf32, #tpu.memory_space<vmem>>, vector<16x1xf32>
    tpu.vector_store %arg3[%c0_6, %c0_7], %16 {strides = array<i32>} : memref<16x1xf32, #tpu.memory_space<vmem>>, vector<16x1xf32>,
    return
  }
  func.func @transform_0(%arg0: i32) -> (i32, i32) {
    %c0_i32 = arith.constant 0 : i32
    %c0_i32_0 = arith.constant 0 : i32
    return %arg0, %c0_i32 : i32, i32
  }
  func.func @transform_1(%arg0: i32) -> (i32, i32) {
    %c0_i32 = arith.constant 0 : i32
    %c0_i32_0 = arith.constant 0 : i32
    return %arg0, %c0_i32 : i32, i32
  }
  func.func @transform_2(%arg0: i32) -> (i32, i32) {
    %c0_i32 = arith.constant 0 : i32
    %c0_i32_0 = arith.constant 0 : i32
    return %arg0, %c0_i32 : i32, i32
  }
}

</mosaic_0001>

<bundles_post_ra>
// kernel: tpu_custom_call.1
= control target key start
LH: loop header
LB: loop body
LE: loop exit
PB: predicated region body
PF: predicated region fallthrough
CT: control target
= control target key end

     0   :  { %7 = vsyncpa [#allocation3], 0  ;;  %s193_s0 = inlined_call_operand.hbm [shape: f32[16,128], index: 0, kind: input, shape index: {}]   ;;  %s194_s1 = inlined_call_operand.hbm [shape: f32[16,128], index: 1, kind: input, shape index: {}]   ;;  %s195_s2 = inlined_call_operand.vmem [shape: f32[16,1], index: 2, kind: output, shape index: {}]  }
   0x1   :  { %8 = vsyncpa [#allocation5], 0  ;;  %s144_s9 = smov [#allocation2]   ;;  %s96_s13 = scalar_lea.hbm %s193_s0, 256 }
   0x2   :  { %s14_s10 = sshll.u32 %s144_s9, 4  ;;  %p97_p0 = scmp.ne.s32.totalorder %s193_s0, %s96_s13  ;;  %s15_s10 = int_to_ptr.vmem [resolvable:$true] %s14_s10 }
   0x3   :  { %p100_p1 = scmp.lt.u32.totalorder %s96_s13, %s193_s0 }
   0x5   :  { %p102_p2 = pnand %p100_p1, %p97_p0 }
   0x7   :  { %105 = shalt.err (!%p102_p2)
}
   0x8   :  { %s106_s18 = scalar_lea.vmem %s15_s10, 256  ;;  %p111_p4 = scmp.lt.s32.totalorder %s15_s10, %s15_s10 }
   0x9   :  { %p107_p3 = scmp.ne.s32.totalorder %s15_s10, %s106_s18  ;;  %p112_p5 = scmp.lt.s32.totalorder %s106_s18, %s106_s18 }
   0xb   :  { %p113_p6 = por %p112_p5, %p111_p4 }
   0xd   :  { %p114_p7 = pnand %p113_p6, %p107_p3 }
   0xf   :  { %117 = shalt.err (!%p114_p7)
}
  0x10   :  { %s145_s19 = smov 128   ;;  %s146_s20 = smov 8  }
  0x11   :  { %20 = dma.hbm_to_vmem [thread:$0]  %s193_s0, 256, %s15_s10, [#allocation3], %s145_s19, %s145_s19, %s146_s20  }
  0x12   :  { %s147_s23 = smov [#allocation4]   ;;  %s118_s27 = scalar_lea.hbm %s194_s1, 256 }
  0x13   :  { %s26_s24 = sshll.u32 %s147_s23, 4  ;;  %p119_p8 = scmp.ne.s32.totalorder %s194_s1, %s118_s27  ;;  %s27_s24 = int_to_ptr.vmem [resolvable:$true] %s26_s24 }
  0x14   :  { %p122_p9 = scmp.lt.u32.totalorder %s118_s27, %s194_s1 }
  0x16   :  { %p124_p10 = pnand %p122_p9, %p119_p8 }
  0x18   :  { %127 = shalt.err (!%p124_p10)
}
  0x19   :  { %s128_s4 = scalar_lea.vmem %s27_s24, 256  ;;  %p133_p12 = scmp.lt.s32.totalorder %s27_s24, %s27_s24 }
  0x1a   :  { %p129_p11 = scmp.ne.s32.totalorder %s27_s24, %s128_s4  ;;  %p134_p13 = scmp.lt.s32.totalorder %s128_s4, %s128_s4 }
  0x1c   :  { %p135_p0 = por %p134_p13, %p133_p12 }
  0x1e   :  { %p136_p1 = pnand %p135_p0, %p129_p11 }
  0x20   :  { %139 = shalt.err (!%p136_p1)
}
  0x21   :  { %32 = dma.hbm_to_vmem [thread:$0]  %s194_s1, 256, %s27_s24, [#allocation5], %s145_s19, %s145_s19, %s146_s20  }
  0x22   :  { %140 = dma.done.wait [#allocation3], 256  }
  0x23   :  { %141 = vsyncadd [#allocation3], 4294967040 }
  0x24   :  { %142 = dma.done.wait [#allocation5], 256  }
  0x25   :  { %143 = vsyncadd [#allocation5], 4294967040  ;;  %v39_v0 = vld [vmem:[#allocation2] sm:$0xff]  ;;  %v40_v1 = vld [vmem:[#allocation2 + $0x8] sm:$0xff]  ;;  %vm75_vm0 = vcmask 7168  }
  0x26   :  { %43 = vmax.xlane.f32.xlu0 %v39_v0  ;;  %v41_v2 = vld [vmem:[#allocation4] sm:$0xff]  ;;  %v42_v12 = vld [vmem:[#allocation4 + $0x8] sm:$0xff] }
  0x2a   :  { %45 = vmax.xlane.f32.xlu0 %v40_v1 }
  0x2e   :  { %61 = vadd.xlane.f32.xlu0 %v41_v2 }
  0xb3   :  { %v44_v3 = vpop.xlane.xlu0 %43 }
  0xb4   :  { %v47_v4 = vsub.f32 %v39_v0, %v44_v3 }
  0xb6   :  { %v49_v5 = vmul.f32 1.442695, %v47_v4  ;;  %v65_v6 = vmul.f32 %v47_v4, %v41_v2 }
  0xb7   :  { %v46_v7 = vpop.xlane.xlu0 %45 }
  0xb8   :  { %v48_v8 = vsub.f32 %v40_v1, %v46_v7  ;;  %67 = vadd.xlane.f32.xlu0 %v65_v6  ;;  %88 = vpow2.f32 %v49_v5 }
  0xba   :  { %v51_v9 = vmul.f32 1.442695, %v48_v8  ;;  %v66_v13 = vmul.f32 %v48_v8, %v42_v12 }
  0xbb   :  { %v62_v16 = vpop.xlane.xlu0 %61 }
  0xbc   :  { %90 = vpow2.f32 %v51_v9 }
  0xc2   :  { %v89_v10 = vpop.eup %88 }
  0xc3   :  { %53 = vadd.xlane.f32.xlu1 %v89_v10 }
  0xc6   :  { %v91_v11 = vpop.eup %90 }
  0xc7   :  { %55 = vadd.xlane.f32.xlu1 %v91_v11 }
  0xcb   :  { %63 = vadd.xlane.f32.xlu1 %v42_v12 }
  0xcf   :  { %69 = vadd.xlane.f32.xlu1 %v66_v13 }
 0x145   :  { %v68_v22 = vpop.xlane.xlu0 %67 }
 0x150   :  { %v54_v14 = vpop.xlane.xlu1 %53 }
 0x151   :  { %92 = vlog2.f32 %v54_v14 }
 0x154   :  { %v56_v15 = vpop.xlane.xlu1 %55 }
 0x155   :  { %94 = vlog2.f32 %v56_v15 }
 0x158   :  { %v64_v19 = vpop.xlane.xlu1 %63 }
 0x15b   :  { %v93_v17 = vpop.eup %92 }
 0x15c   :  { %v58_v18 = vmul.f32 0.6931472, %v93_v17  ;;  %v70_v26 = vpop.xlane.xlu1 %69 }
 0x15e   :  { %v71_v20 = vmul.f32 %v62_v16, %v58_v18 }
 0x15f   :  { %v95_v21 = vpop.eup %94 }
 0x160   :  { %v73_v23 = vsub.f32 %v71_v20, %v68_v22  ;;  %v60_v24 = vmul.f32 0.6931472, %v95_v21 }
 0x162   :  { %v72_v25 = vmul.f32 %v64_v19, %v60_v24  ;;  %76 = vst.msk [vmem:[%s195_s2] sm:$0xff] %vm75_vm0, %v73_v23 }
 0x164   :  { %v74_v27 = vsub.f32 %v72_v25, %v70_v26 }
 0x166   :  { %77 = vst.msk [vmem:[%s195_s2 + $0x8] sm:$0xff] %vm75_vm0, %v74_v27 }
 0x167   :  { %82 = vsyncpa [#allocation3], 1 }
 0x168   :  { %83 = vsyncpa [#allocation5], 1 }

</bundles_post_ra>
